<compile_context>
chip_gen: v7x
topology: tpu7x:2x2x1
jax: 0.10.0
libtpu: 0.0.40
codegen_flags: <defaults>
</compile_context>

<pallas_src>
import jax
import jax.numpy as jnp
from jax import lax
from jax.experimental import pallas as pl
from jax.experimental.pallas import tpu as pltpu

_EPS = 1e-5


def _pick_l_tile(n, c, hw, budget_bytes=1 << 20):
    """Lane-dense L tile: a multiple of 128, or the full H*W extent."""
    per_col = 4 * n * c  # f32 bytes per (N, C) column of the (N, C, HW) view
    tl = max(128, (budget_bytes // per_col) // 128 * 128)
    if hw <= tl:
        return hw  # full extent block is always legal
    return tl


def _pick_c_block(c):
    """Split channels in two (sublane-aligned) so v7x megacore gets 2+ tiles."""
    half = c // 2
    if c % 2 == 0 and half % 8 == 0:
        return half
    return c


def bn_add_relu(x22, x18, gamma, beta, eps=_EPS):
    """relu(batchnorm(x22, batch stats) + x18). NCHW in / NCHW out."""
    N, C, H, W = x22.shape
    HW = H * W
    count = float(N * HW)

    # Free reshapes (no data movement).
    x3 = x22.reshape(N, C, HW)
    s3 = x18.reshape(N, C, HW)
    g3 = gamma.reshape(1, C, 1).astype(jnp.float32)
    b3 = beta.reshape(1, C, 1).astype(jnp.float32)

    tl = _pick_l_tile(N, C, HW)
    cb = _pick_c_block(C)
    num_l = pl.cdiv(HW, tl)
    num_c = C // cb
    needs_mask = (num_l * tl) != HW  # partial last L tile -> mask for stats

    # ------------- Pass 1: per-channel scale/shift from batch stats --------
    def stats_kernel(x_ref, g_ref, b_ref, scale_ref, shift_ref, sum_acc, sq_acc):
        li = pl.program_id(1)

        @pl.when(li == 0)
        def _():
            sum_acc[...] = jnp.zeros_like(sum_acc)
            sq_acc[...] = jnp.zeros_like(sq_acc)

        x = x_ref[...].astype(jnp.float32)
        if needs_mask:
            col = lax.broadcasted_iota(jnp.int32, x.shape, 2) + li * tl
            x = jnp.where(col < HW, x, 0.0)

        # Reduce lanes first (XLU), then the batch axis (VPU adds).
        sum_acc[...] += jnp.sum(x, axis=2, keepdims=True).sum(axis=0, keepdims=True)
        sq_acc[...] += jnp.sum(x * x, axis=2, keepdims=True).sum(axis=0, keepdims=True)

        @pl.when(li == pl.num_programs(1) - 1)
        def _():
            inv_n = jnp.float32(1.0 / count)
            mean = sum_acc[...] * inv_n
            var = sq_acc[...] * inv_n - mean * mean  # biased variance (torch BN)
            inv = lax.rsqrt(jnp.maximum(var, 0.0) + jnp.float32(eps))
            scale = g_ref[...] * inv
            scale_ref[...] = scale
            shift_ref[...] = b_ref[...] - mean * scale

    scale, shift = pl.pallas_call(
        stats_kernel,
        out_shape=(
            jax.ShapeDtypeStruct((1, C, 1), jnp.float32),
            jax.ShapeDtypeStruct((1, C, 1), jnp.float32),
        ),
        grid_spec=pltpu.PrefetchScalarGridSpec(
            num_scalar_prefetch=0,
            grid=(num_c, num_l),
            in_specs=[
                pl.BlockSpec((N, cb, tl), lambda c, l: (0, c, l)),
                pl.BlockSpec((1, cb, 1), lambda c, l: (0, c, 0)),
                pl.BlockSpec((1, cb, 1), lambda c, l: (0, c, 0)),
            ],
            out_specs=(
                pl.BlockSpec((1, cb, 1), lambda c, l: (0, c, 0)),
                pl.BlockSpec((1, cb, 1), lambda c, l: (0, c, 0)),
            ),
            scratch_shapes=[
                pltpu.VMEM((1, cb, 1), jnp.float32),
                pltpu.VMEM((1, cb, 1), jnp.float32),
            ],
        ),
        compiler_params=pltpu.CompilerParams(
            dimension_semantics=("parallel", "arbitrary")),
    )(x3, g3, b3)

    # ------------- Pass 2: normalize + residual add + ReLU -----------------
    def apply_kernel(x_ref, skip_ref, scale_ref, shift_ref, o_ref):
        x = x_ref[...].astype(jnp.float32)
        skip = skip_ref[...].astype(jnp.float32)
        y = x * scale_ref[...] + shift_ref[...] + skip
        o_ref[...] = jnp.maximum(y, 0.0).astype(o_ref.dtype)

    out3 = pl.pallas_call(
        apply_kernel,
        out_shape=jax.ShapeDtypeStruct((N, C, HW), x22.dtype),
        grid_spec=pltpu.PrefetchScalarGridSpec(
            num_scalar_prefetch=0,
            grid=(num_c, num_l),
            in_specs=[
                pl.BlockSpec((N, cb, tl), lambda c, l: (0, c, l)),
                pl.BlockSpec((N, cb, tl), lambda c, l: (0, c, l)),
                pl.BlockSpec((1, cb, 1), lambda c, l: (0, c, 0)),
                pl.BlockSpec((1, cb, 1), lambda c, l: (0, c, 0)),
            ],
            out_specs=pl.BlockSpec((N, cb, tl), lambda c, l: (0, c, l)),
        ),
        compiler_params=pltpu.CompilerParams(
            dimension_semantics=("parallel", "parallel")),
    )(x3, s3, scale, shift)

    return out3.reshape(N, C, H, W)


def _reference(x22, x18, gamma, beta):
    mean = jnp.mean(x22, axis=(0, 2, 3), keepdims=True)
    var = jnp.mean((x22 - mean) ** 2, axis=(0, 2, 3), keepdims=True)
    g = gamma.reshape(1, -1, 1, 1)
    b = beta.reshape(1, -1, 1, 1)
    y = (x22 - mean) / jnp.sqrt(var + _EPS) * g + b
    return jnp.maximum(y + x18, 0.0)


if __name__ == "__main__":
    # Small shapes consistent with the module's (1, 64, 56, 56) pattern:
    # keep C=64 (matches BatchNorm2d(64)), shrink batch/spatial.
    N, C, H, W = 2, 64, 8, 8

    key = jax.random.PRNGKey(0)
    k1, k2, k3, k4 = jax.random.split(key, 4)
    x22 = jax.random.normal(k1, (N, C, H, W), dtype=jnp.float32)
    x18 = jax.random.normal(k2, (N, C, H, W), dtype=jnp.float32)
    # Deterministic, nontrivial affine params (torch default is ones/zeros;
    # perturb so the affine path is exercised).
    gamma = 1.0 + 0.1 * jax.random.normal(k3, (C,), dtype=jnp.float32)
    beta = 0.1 * jax.random.normal(k4, (C,), dtype=jnp.float32)

    out = bn_add_relu(x22, x18, gamma, beta)
    out = jax.block_until_ready(out)

    ref = _reference(x22, x18, gamma, beta)
    assert out.shape == (N, C, H, W)
    assert jnp.allclose(out, ref, atol=1e-4, rtol=1e-4)

    print("KERNEL_OK")
</pallas_src>

<mosaic_0001>
module attributes {stable_mosaic.version = 11 : i64} {
  func.func @stats_kernel(%arg0: i32, %arg1: i32, %arg2: memref<2x32x64xf32, #tpu.memory_space<vmem>>, %arg3: memref<1x32x1xf32, #tpu.memory_space<vmem>>, %arg4: memref<1x32x1xf32, #tpu.memory_space<vmem>>, %arg5: memref<1x32x1xf32, #tpu.memory_space<vmem>>, %arg6: memref<1x32x1xf32, #tpu.memory_space<vmem>>, %arg7: memref<1x32x1xf32, #tpu.memory_space<vmem>>, %arg8: memref<1x32x1xf32, #tpu.memory_space<vmem>>) attributes {dimension_semantics = [#tpu.dimension_semantics<parallel>, #tpu.dimension_semantics<arbitrary>], iteration_bounds = array<i64: 2, 1>, scalar_prefetch = 0 : i64, scratch_operands = 2 : i64, tpu.core_type = #tpu.core_type<tc>, window_params = [{transform_indices = @transform_0, window_bounds = array<i64: 2, 32, 64>}, {transform_indices = @transform_1, window_bounds = array<i64: 1, 32, 1>}, {transform_indices = @transform_2, window_bounds = array<i64: 1, 32, 1>}, {transform_indices = @transform_3, window_bounds = array<i64: 1, 32, 1>}, {transform_indices = @transform_4, window_bounds = array<i64: 1, 32, 1>}]} {
    %c0_i32 = arith.constant 0 : i32
    %0 = arith.cmpi eq, %arg1, %c0_i32 : i32
    %1 = arith.extui %0 : i1 to i32
    %c0_i32_0 = arith.constant 0 : i32
    %2 = arith.cmpi ne, %1, %c0_i32_0 : i32
    scf.if %2 {
      %cst_20 = arith.constant 0.000000e+00 : f32
      %22 = vector.broadcast %cst_20 : f32 to vector<1x32x1xf32>
      %c0_21 = arith.constant 0 : index
      %c0_22 = arith.constant 0 : index
      %c0_23 = arith.constant 0 : index
      %23 = vector.load %arg7[%c0_21, %c0_22, %c0_23] : memref<1x32x1xf32, #tpu.memory_space<vmem>>, vector<1x32x1xf32>
      tpu.vector_store %arg7[%c0_21, %c0_22, %c0_23], %22 {strides = array<i32>} : memref<1x32x1xf32, #tpu.memory_space<vmem>>, vector<1x32x1xf32>,
      %cst_24 = arith.constant 0.000000e+00 : f32
      %24 = vector.broadcast %cst_24 : f32 to vector<1x32x1xf32>
      %c0_25 = arith.constant 0 : index
      %c0_26 = arith.constant 0 : index
      %c0_27 = arith.constant 0 : index
      %25 = vector.load %arg8[%c0_25, %c0_26, %c0_27] : memref<1x32x1xf32, #tpu.memory_space<vmem>>, vector<1x32x1xf32>
      tpu.vector_store %arg8[%c0_25, %c0_26, %c0_27], %24 {strides = array<i32>} : memref<1x32x1xf32, #tpu.memory_space<vmem>>, vector<1x32x1xf32>,
    } else {
    }
    %c0 = arith.constant 0 : index
    %c0_1 = arith.constant 0 : index
    %c0_2 = arith.constant 0 : index
    %3 = vector.load %arg2[%c0, %c0_1, %c0_2] : memref<2x32x64xf32, #tpu.memory_space<vmem>>, vector<2x32x64xf32>
    %c0_3 = arith.constant 0 : index
    %c0_4 = arith.constant 0 : index
    %c0_5 = arith.constant 0 : index
    %4 = vector.load %arg7[%c0_3, %c0_4, %c0_5] : memref<1x32x1xf32, #tpu.memory_space<vmem>>, vector<1x32x1xf32>
    %cst = arith.constant dense<0.000000e+00> : vector<2x32xf32>
    %5 = vector.multi_reduction <add>, %3, %cst [2] : vector<2x32x64xf32> to vector<2x32xf32>
    %6 = vector.shape_cast %5 : vector<2x32xf32> to vector<2x32x1xf32>
    %cst_6 = arith.constant dense<0.000000e+00> : vector<32x1xf32>
    %7 = vector.multi_reduction <add>, %6, %cst_6 [0] : vector<2x32x1xf32> to vector<32x1xf32>
    %8 = vector.shape_cast %7 : vector<32x1xf32> to vector<1x32x1xf32>
    %9 = arith.addf %4, %8 : vector<1x32x1xf32>
    %c0_7 = arith.constant 0 : index
    %c0_8 = arith.constant 0 : index
    %c0_9 = arith.constant 0 : index
    %10 = vector.load %arg7[%c0_7, %c0_8, %c0_9] : memref<1x32x1xf32, #tpu.memory_space<vmem>>, vector<1x32x1xf32>
    tpu.vector_store %arg7[%c0_7, %c0_8, %c0_9], %9 {strides = array<i32>} : memref<1x32x1xf32, #tpu.memory_space<vmem>>, vector<1x32x1xf32>,
    %c0_10 = arith.constant 0 : index
    %c0_11 = arith.constant 0 : index
    %c0_12 = arith.constant 0 : index
    %11 = vector.load %arg8[%c0_10, %c0_11, %c0_12] : memref<1x32x1xf32, #tpu.memory_space<vmem>>, vector<1x32x1xf32>
    %12 = arith.mulf %3, %3 : vector<2x32x64xf32>
    %cst_13 = arith.constant dense<0.000000e+00> : vector<2x32xf32>
    %13 = vector.multi_reduction <add>, %12, %cst_13 [2] : vector<2x32x64xf32> to vector<2x32xf32>
    %14 = vector.shape_cast %13 : vector<2x32xf32> to vector<2x32x1xf32>
    %cst_14 = arith.constant dense<0.000000e+00> : vector<32x1xf32>
    %15 = vector.multi_reduction <add>, %14, %cst_14 [0] : vector<2x32x1xf32> to vector<32x1xf32>
    %16 = vector.shape_cast %15 : vector<32x1xf32> to vector<1x32x1xf32>
    %17 = arith.addf %11, %16 : vector<1x32x1xf32>
    %c0_15 = arith.constant 0 : index
    %c0_16 = arith.constant 0 : index
    %c0_17 = arith.constant 0 : index
    %18 = vector.load %arg8[%c0_15, %c0_16, %c0_17] : memref<1x32x1xf32, #tpu.memory_space<vmem>>, vector<1x32x1xf32>
    tpu.vector_store %arg8[%c0_15, %c0_16, %c0_17], %17 {strides = array<i32>} : memref<1x32x1xf32, #tpu.memory_space<vmem>>, vector<1x32x1xf32>,
    %c0_i32_18 = arith.constant 0 : i32
    %19 = arith.cmpi eq, %arg1, %c0_i32_18 : i32
    %20 = arith.extui %19 : i1 to i32
    %c0_i32_19 = arith.constant 0 : i32
    %21 = arith.cmpi ne, %20, %c0_i32_19 : i32
    scf.if %21 {
      %c0_20 = arith.constant 0 : index
      %c0_21 = arith.constant 0 : index
      %c0_22 = arith.constant 0 : index
      %22 = vector.load %arg7[%c0_20, %c0_21, %c0_22] : memref<1x32x1xf32, #tpu.memory_space<vmem>>, vector<1x32x1xf32>
      %cst_23 = arith.constant 7.812500e-03 : f32
      %23 = vector.broadcast %cst_23 : f32 to vector<1x32x1xf32>
      %24 = arith.mulf %22, %23 : vector<1x32x1xf32>
      %c0_24 = arith.constant 0 : index
      %c0_25 = arith.constant 0 : index
      %c0_26 = arith.constant 0 : index
      %25 = vector.load %arg8[%c0_24, %c0_25, %c0_26] : memref<1x32x1xf32, #tpu.memory_space<vmem>>, vector<1x32x1xf32>
      %cst_27 = arith.constant 7.812500e-03 : f32
      %26 = vector.broadcast %cst_27 : f32 to vector<1x32x1xf32>
      %27 = arith.mulf %25, %26 : vector<1x32x1xf32>
      %28 = arith.mulf %24, %24 : vector<1x32x1xf32>
      %29 = arith.subf %27, %28 : vector<1x32x1xf32>
      %cst_28 = arith.constant 0.000000e+00 : f32
      %30 = vector.broadcast %cst_28 : f32 to vector<1x32x1xf32>
      %31 = arith.maximumf %29, %30 : vector<1x32x1xf32>
      %cst_29 = arith.constant 9.99999974E-6 : f32
      %32 = vector.broadcast %cst_29 : f32 to vector<1x32x1xf32>
      %33 = arith.addf %31, %32 : vector<1x32x1xf32>
      %34 = math.rsqrt %33 : vector<1x32x1xf32>
      %c0_30 = arith.constant 0 : index
      %c0_31 = arith.constant 0 : index
      %c0_32 = arith.constant 0 : index
      %35 = vector.load %arg3[%c0_30, %c0_31, %c0_32] : memref<1x32x1xf32, #tpu.memory_space<vmem>>, vector<1x32x1xf32>
      %36 = arith.mulf %35, %34 : vector<1x32x1xf32>
      %c0_33 = arith.constant 0 : index
      %c0_34 = arith.constant 0 : index
      %c0_35 = arith.constant 0 : index
      %37 = vector.load %arg5[%c0_33, %c0_34, %c0_35] : memref<1x32x1xf32, #tpu.memory_space<vmem>>, vector<1x32x1xf32>
      tpu.vector_store %arg5[%c0_33, %c0_34, %c0_35], %36 {strides = array<i32>} : memref<1x32x1xf32, #tpu.memory_space<vmem>>, vector<1x32x1xf32>,
      %c0_36 = arith.constant 0 : index
      %c0_37 = arith.constant 0 : index
      %c0_38 = arith.constant 0 : index
      %38 = vector.load %arg4[%c0_36, %c0_37, %c0_38] : memref<1x32x1xf32, #tpu.memory_space<vmem>>, vector<1x32x1xf32>
      %39 = arith.mulf %24, %36 : vector<1x32x1xf32>
      %40 = arith.subf %38, %39 : vector<1x32x1xf32>
      %c0_39 = arith.constant 0 : index
      %c0_40 = arith.constant 0 : index
      %c0_41 = arith.constant 0 : index
      %41 = vector.load %arg6[%c0_39, %c0_40, %c0_41] : memref<1x32x1xf32, #tpu.memory_space<vmem>>, vector<1x32x1xf32>
      tpu.vector_store %arg6[%c0_39, %c0_40, %c0_41], %40 {strides = array<i32>} : memref<1x32x1xf32, #tpu.memory_space<vmem>>, vector<1x32x1xf32>,
    } else {
    }
    return
  }
  func.func @transform_0(%arg0: i32, %arg1: i32) -> (i32, i32, i32) {
    %c0_i32 = arith.constant 0 : i32
    %c0_i32_0 = arith.constant 0 : i32
    return %c0_i32, %arg0, %arg1 : i32, i32, i32
  }
  func.func @transform_1(%arg0: i32, %arg1: i32) -> (i32, i32, i32) {
    %c0_i32 = arith.constant 0 : i32
    %c0_i32_0 = arith.constant 0 : i32
    %c0_i32_1 = arith.constant 0 : i32
    return %c0_i32, %arg0, %c0_i32_0 : i32, i32, i32
  }
  func.func @transform_2(%arg0: i32, %arg1: i32) -> (i32, i32, i32) {
    %c0_i32 = arith.constant 0 : i32
    %c0_i32_0 = arith.constant 0 : i32
    %c0_i32_1 = arith.constant 0 : i32
    return %c0_i32, %arg0, %c0_i32_0 : i32, i32, i32
  }
  func.func @transform_3(%arg0: i32, %arg1: i32) -> (i32, i32, i32) {
    %c0_i32 = arith.constant 0 : i32
    %c0_i32_0 = arith.constant 0 : i32
    %c0_i32_1 = arith.constant 0 : i32
    return %c0_i32, %arg0, %c0_i32_0 : i32, i32, i32
  }
  func.func @transform_4(%arg0: i32, %arg1: i32) -> (i32, i32, i32) {
    %c0_i32 = arith.constant 0 : i32
    %c0_i32_0 = arith.constant 0 : i32
    %c0_i32_1 = arith.constant 0 : i32
    return %c0_i32, %arg0, %c0_i32_0 : i32, i32, i32
  }
}

</mosaic_0001>

<bundles_post_ra>
// kernel: tpu_custom_call.1
= control target key start
LH: loop header
LB: loop body
LE: loop exit
PB: predicated region body
PF: predicated region fallthrough
CT: control target
= control target key end

     0   :  { %s780_s15 = smov 0   ;;  %s782_s16 = smov 0   ;;  %s912_s0 = inlined_call_operand.vmem [shape: f32[2,64,64], index: 0, kind: input, shape index: {}]   ;;  %s913_s1 = inlined_call_operand.vmem [shape: f32[1,64,1], index: 1, kind: input, shape index: {}]   ;;  %s914_s2 = inlined_call_operand.vmem [shape: f32[1,64,1], index: 2, kind: input, shape index: {}]   ;;  %s915_s3 = inlined_call_operand.vmem [shape: f32[1,64,1], index: 3, kind: output, shape index: {0}]   ;;  %s916_s4 = inlined_call_operand.vmem [shape: f32[1,64,1], index: 4, kind: output, shape index: {1}]  }
   0x1   :  { %s784_s17 = smov 0   ;;  %s786_s18 = smov 0  }
   0x2   :  { %s788_s19 = smov 0  }
   0x3 LB: > { %s27_s20 = sadd.s32 1, %s748_s18  ;;  %p43_p1 = scmp.ne.s32.totalorder %s740_s16, %s736_s15  ;;  %s752_s19 = sphi %s788_s19, %s15_s19   ;;  %s748_s18 = sphi %s786_s18, %s920_s18   ;;  %s744_s17 = sphi %s784_s17, %s919_s17   ;;  %s740_s16 = sphi %s782_s16, %s918_s16   ;;  %s736_s15 = sphi %s780_s15, %s917_s15  }
   0x4   : > { %p29_p0 = scmp.ge.s32.totalorder %s27_s20, 2  ;;  %p44_p2 = scmp.eq.s32.totalorder %s752_s19, 0 }
   0x5   : > { %s36_s22 = sadd.s32 1, %s740_s16  ;;  %p648_p5 = scmp.ge.s32.totalorder %s752_s19, 2 }
   0x6   : > { %s922_s20 = smov (%p29_p0, %s27_s20), 0  ;;  %p45_p3 = por %p44_p2, %p43_p1 }
   0x7   : > { %s31_s21 = ssub.s32 %s748_s18, %s922_s20  ;;  %173 = sbr.rel (%p648_p5) target bundleno = 22 (0x16), region = 16 }
   0x8   : > { %p34_p4 = scmp.eq.s32.totalorder %s31_s21, 0 }
   0xa   : > { %s815_s23 = scalar_select %p34_p4, %s740_s16, %s36_s22  }
   0xe   : > { %176 = sbr.rel (!%p45_p3) target bundleno = 22 (0x16), region = 20  ;;  %s178_s24 = sand.u32 (%p45_p3), 1, %s740_s16  }
   0xf   : > { %s664_s25 = sshll.u32 (%p45_p3), %s748_s18, 5  ;;  %s649_s26 = sshll.u32 (%p45_p3), %s178_s24, 6 }
  0x10   : > { %s184_s29 = scalar_lea.vmem (%p45_p3), %s912_s0, %s664_s25  ;;  %s180_s30 = scalar_lea.vmem (%p45_p3), [#allocation4], %s649_s26 }
  0x11   : > { %v226_v0 = vld [vmem:[%s184_s29] sm:$0xff] (%p45_p3)  ;;  %v228_v1 = vld [vmem:[%s184_s29 + $0x8] sm:$0xff] (%p45_p3)  ;;  %v230_v2 = vld [vmem:[%s184_s29 + $0x10] sm:$0xff] (%p45_p3) }
  0x12   : > { %227 = vst [vmem:[%s180_s30] sm:$0xff] (%p45_p3), %v226_v0  ;;  %229 = vst [vmem:[%s180_s30 + $0x8] sm:$0xff] (%p45_p3), %v228_v1  ;;  %v232_v3 = vld [vmem:[%s184_s29 + $0x18] sm:$0xff] (%p45_p3)  ;;  %v234_v4 = vld [vmem:[%s184_s29 + $0x40] sm:$0xff] (%p45_p3) }
  0x13   : > { %231 = vst [vmem:[%s180_s30 + $0x10] sm:$0xff] (%p45_p3), %v230_v2  ;;  %v236_v5 = vld [vmem:[%s184_s29 + $0x48] sm:$0xff] (%p45_p3)  ;;  %233 = vst [vmem:[%s180_s30 + $0x18] sm:$0xff] (%p45_p3), %v232_v3  ;;  %v238_v6 = vld [vmem:[%s184_s29 + $0x50] sm:$0xff] (%p45_p3) }
  0x14   : > { %235 = vst [vmem:[%s180_s30 + $0x20] sm:$0xff] (%p45_p3), %v234_v4  ;;  %237 = vst [vmem:[%s180_s30 + $0x28] sm:$0xff] (%p45_p3), %v236_v5  ;;  %v240_v7 = vld [vmem:[%s184_s29 + $0x58] sm:$0xff] (%p45_p3) }
  0x15   : > { %239 = vst [vmem:[%s180_s30 + $0x30] sm:$0xff] %v238_v6  ;;  %241 = vst [vmem:[%s180_s30 + $0x38] sm:$0xff] %v240_v7 }
  0x16 PF: > { %p652_p6 = scmp.ge.s32.totalorder %s752_s19, 1  ;;  %p264_p7 = scmp.lt.s32.totalorder %s752_s19, 3 }
  0x18   : > { %p265_p8 = pnand %p652_p6, %p264_p7 }
  0x19   : > { %s271_s5 = sand.u32 (!%p265_p8), 1, %s736_s15   ;;  %vm361_vm0 = vcmask (!%p265_p8), 523264   ;;  %vm340_vm1 = vcmask (!%p265_p8), 7168   ;;  %v754_v26 = vmov (!%p265_p8), 0.0   ;;  %s654_s8 = sshll.u32 (!%p265_p8), %s744_s17, 2 }
  0x1a   : > { %268 = sbr.rel (%p265_p8) target bundleno = 238 (0xee), region = 66  ;;  %s653_s6 = sshll.u32 (!%p265_p8), %s271_s5, 6  ;;  %342 = vst.msk [vmem:[#allocation2 + $0x8] sm:$0xff] (!%p265_p8), %vm340_vm1, %v754_v26  ;;  %341 = vst.msk [vmem:[#allocation2] sm:$0xff] (!%p265_p8), %vm340_vm1, %v754_v26 }
  0x1b   : > { %s273_s7 = scalar_lea.vmem (!%p265_p8), [#allocation4], %s653_s6  ;;  %343 = vst.msk [vmem:[#allocation2 + $0x10] sm:$0xff] (!%p265_p8), %vm340_vm1, %v754_v26  ;;  %344 = vst.msk [vmem:[#allocation2 + $0x18] sm:$0xff] (!%p265_p8), %vm340_vm1, %v754_v26  ;;  %p313_p9 = scmp.lt.s32.totalorder (!%p265_p8), %s654_s8, 7 }
  0x1c   : > { %v350_v8 = vld [vmem:[%s273_s7 + $0x8] sm:$0xff] (!%p265_p8)  ;;  %v349_v9 = vld [vmem:[%s273_s7] sm:$0xff] (!%p265_p8)  ;;  %v355_v16 = vld [vmem:[%s273_s7 + $0x30] sm:$0xff] (!%p265_p8)  ;;  %345 = vst.msk [vmem:[#allocation3] sm:$0xff] (!%p265_p8), %vm340_vm1, %v754_v26 }
  0x1d   : > { %v354_v10 = vld [vmem:[%s273_s7 + $0x28] sm:$0xff] (!%p265_p8)  ;;  %v365_v11 = vsel (!%p265_p8), %vm361_vm0, %v350_v8, 0.0  ;;  %v362_v12 = vsel (!%p265_p8), %vm361_vm0, %v349_v9, 0.0  ;;  %v353_v13 = vld [vmem:[%s273_s7 + $0x20] sm:$0xff] (!%p265_p8)  ;;  %v351_v17 = vld [vmem:[%s273_s7 + $0x10] sm:$0xff] (!%p265_p8)  ;;  %v403_v18 = vmul.f32 (!%p265_p8), %v349_v9, %v349_v9  ;;  %v380_v19 = vsel (!%p265_p8), %vm361_vm0, %v355_v16, 0.0 }
  0x1e   : > { %366 = vadd.xlane.f32.xlu1 (!%p265_p8), %v365_v11  ;;  %363 = vadd.xlane.f32.xlu0 (!%p265_p8), %v362_v12  ;;  %v377_v14 = vsel (!%p265_p8), %vm361_vm0, %v354_v10, 0.0  ;;  %v374_v15 = vsel (!%p265_p8), %vm361_vm0, %v353_v13, 0.0  ;;  %v368_v20 = vsel (!%p265_p8), %vm361_vm0, %v351_v17, 0.0  ;;  %v407_v21 = vmul.f32 (!%p265_p8), %v353_v13, %v353_v13  ;;  %v356_v24 = vld [vmem:[%s273_s7 + $0x38] sm:$0xff] (!%p265_p8)  ;;  %346 = vst.msk [vmem:[#allocation3 + $0x8] sm:$0xff] (!%p265_p8), %vm340_vm1, %v754_v26  ;;  %347 = vst.msk [vmem:[#allocation3 + $0x10] sm:$0xff] (!%p265_p8), %vm340_vm1, %v754_v26 }
  0x1f   : > { %v411_v23 = vsel (!%p265_p8), %vm361_vm0, %v403_v18, 0.0  ;;  %v352_v25 = vld [vmem:[%s273_s7 + $0x18] sm:$0xff] (!%p265_p8)  ;;  %348 = vst.msk [vmem:[#allocation3 + $0x18] sm:$0xff] (!%p265_p8), %vm340_vm1, %v754_v26  ;;  %v404_v27 = vmul.f32 (!%p265_p8), %v350_v8, %v350_v8  ;;  %v383_v28 = vsel (!%p265_p8), %vm361_vm0, %v356_v24, 0.0  ;;  %v408_v30 = vmul.f32 (!%p265_p8), %v354_v10, %v354_v10 }
  0x20   : > { %v423_v22 = vsel (!%p265_p8), %vm361_vm0, %v407_v21, 0.0  ;;  %v371_v29 = vsel (!%p265_p8), %vm361_vm0, %v352_v25, 0.0  ;;  %v409_v33 = vmul.f32 (!%p265_p8), %v355_v16, %v355_v16  ;;  %v405_v34 = vmul.f32 (!%p265_p8), %v351_v17, %v351_v17 }
  0x21   : > { %v426_v31 = vsel %vm361_vm0, %v408_v30, 0.0  ;;  %v414_v32 = vsel %vm361_vm0, %v404_v27, 0.0  ;;  %v410_v37 = vmul.f32 %v356_v24, %v356_v24  ;;  %v406_v38 = vmul.f32 %v352_v25, %v352_v25  ;;  %v358_v43 = vld [vmem:[#allocation2 + $0x8] sm:$0xff]  ;;  %v357_v45 = vld [vmem:[#allocation2] sm:$0xff]  ;;  %s924_s8 = smov (!%p313_p9, %s654_s8), 7 }
  0x22   : > { %378 = vadd.xlane.f32.xlu1 %v377_v14  ;;  %375 = vadd.xlane.f32.xlu0 %v374_v15  ;;  %v429_v35 = vsel %vm361_vm0, %v409_v33, 0.0  ;;  %v417_v36 = vsel %vm361_vm0, %v405_v34, 0.0  ;;  %v359_v52 = vld [vmem:[#allocation2 + $0x10] sm:$0xff]  ;;  %v360_v62 = vld [vmem:[#allocation2 + $0x18] sm:$0xff]  ;;  %s655_s9 = sshll.u32 %s924_s8, 3 }
  0x23   : > { %v432_v39 = vsel %vm361_vm0, %v410_v37, 0.0  ;;  %v420_v40 = vsel %vm361_vm0, %v406_v38, 0.0  ;;  %v399_v57 = vld [vmem:[#allocation3] sm:$0xff]  ;;  %s862_s12 = scalar_lea.vmem %s913_s1, %s655_s9  ;;  %s868_s15 = scalar_lea.vmem %s914_s2, %s655_s9 }
  0x24   : > { %s873_s22 = scalar_lea.vmem %s915_s3, %s655_s9  ;;  %s334_s26 = scalar_lea.vmem %s916_s4, %s655_s9 }
  0x25   : > { %v400_v4 = vld [vmem:[#allocation3 + $0x8] sm:$0xff]  ;;  %v401_v11 = vld [vmem:[#allocation3 + $0x10] sm:$0xff] }
  0x26   : > { %381 = vadd.xlane.f32.xlu1 %v380_v19  ;;  %369 = vadd.xlane.f32.xlu0 %v368_v20  ;;  %v402_v20 = vld [vmem:[#allocation3 + $0x18] sm:$0xff] }
  0x2a   : > { %424 = vadd.xlane.f32.xlu1 %v423_v22  ;;  %412 = vadd.xlane.f32.xlu0 %v411_v23 }
  0x2e   : > { %384 = vadd.xlane.f32.xlu1 %v383_v28  ;;  %372 = vadd.xlane.f32.xlu0 %v371_v29 }
  0x32   : > { %427 = vadd.xlane.f32.xlu1 %v426_v31  ;;  %415 = vadd.xlane.f32.xlu0 %v414_v32 }
  0x36   : > { %430 = vadd.xlane.f32.xlu1 %v429_v35  ;;  %418 = vadd.xlane.f32.xlu0 %v417_v36 }
  0x3a   : > { %433 = vadd.xlane.f32.xlu1 %v432_v39  ;;  %421 = vadd.xlane.f32.xlu0 %v420_v40 }
  0xab   : > { %v367_v41 = vpop.xlane.xlu1 %366  ;;  %v364_v42 = vpop.xlane.xlu0 %363 }
  0xaf   : > { %v379_v44 = vpop.xlane.xlu1 %378  ;;  %v376_v46 = vpop.xlane.xlu0 %375 }
  0xb0   : > { %v387_v47 = vadd.f32 %v379_v44, %v367_v41  ;;  %v386_v48 = vadd.f32 %v376_v46, %v364_v42  ;;  %v486_v42 = vld [vmem:[%s862_s12] sm:$0xff] }
  0xb2   : > { %v391_v49 = vadd.f32 %v387_v47, %v358_v43  ;;  %v390_v50 = vadd.f32 %v386_v48, %v357_v45 }
  0xb3   : > { %v382_v51 = vpop.xlane.xlu1 %381  ;;  %v370_v53 = vpop.xlane.xlu0 %369 }
  0xb4   : > { %396 = vst.msk [vmem:[#allocation2 + $0x8] sm:$0xff] %vm340_vm1, %v391_v49  ;;  %395 = vst.msk [vmem:[#allocation2] sm:$0xff] %vm340_vm1, %v390_v50  ;;  %v388_v54 = vadd.f32 %v382_v51, %v370_v53  ;;  %v498_v50 = vld [vmem:[%s868_s15] sm:$0xff] }
  0xb6   : > { %v392_v55 = vadd.f32 %v388_v54, %v359_v52 }
  0xb7   : > { %v425_v56 = vpop.xlane.xlu1 %424  ;;  %v413_v58 = vpop.xlane.xlu0 %412 }
  0xb8   : > { %397 = vst.msk [vmem:[#allocation2 + $0x10] sm:$0xff] %vm340_vm1, %v392_v55  ;;  %v435_v59 = vadd.f32 %v425_v56, %v413_v58  ;;  %v487_v55 = vld [vmem:[%s862_s12 + $0x8] sm:$0xff] }
  0xb9   : > { %v499_v58 = vld [vmem:[%s868_s15 + $0x8] sm:$0xff] }
  0xba   : > { %v439_v60 = vadd.f32 %v435_v59, %v399_v57  ;;  %v488_v59 = vld [vmem:[%s862_s12 + $0x10] sm:$0xff] }
  0xbb   : > { %v385_v61 = vpop.xlane.xlu1 %384  ;;  %v373_v63 = vpop.xlane.xlu0 %372  ;;  %v450_v1 = vld [vmem:[#allocation2] sm:$0xff]  ;;  %v451_v16 = vld [vmem:[#allocation2 + $0x8] sm:$0xff] }
  0xbc   : > { %443 = vst.msk [vmem:[#allocation3] sm:$0xff] %vm340_vm1, %v439_v60  ;;  %v389_v0 = vadd.f32 %v385_v61, %v373_v63  ;;  %v454_v6 = vmul.f32 0.0078125, %v450_v1  ;;  %v455_v22 = vmul.f32 0.0078125, %v451_v16  ;;  %v489_v1 = vld [vmem:[%s862_s12 + $0x18] sm:$0xff] }
  0xbe   : > { %v393_v2 = vadd.f32 %v389_v0, %v360_v62  ;;  %v466_v13 = vmul.f32 %v454_v6, %v454_v6  ;;  %v467_v29 = vmul.f32 %v455_v22, %v455_v22  ;;  %v500_v0 = vld [vmem:[%s868_s15 + $0x10] sm:$0xff] }
  0xbf   : > { %v428_v3 = vpop.xlane.xlu1 %427  ;;  %v416_v5 = vpop.xlane.xlu0 %415  ;;  %v452_v25 = vld [vmem:[#allocation2 + $0x10] sm:$0xff] }
  0xc0   : > { %398 = vst.msk [vmem:[#allocation2 + $0x18] sm:$0xff] %vm340_vm1, %v393_v2  ;;  %v436_v7 = vadd.f32 %v428_v3, %v416_v5  ;;  %v456_v30 = vmul.f32 0.0078125, %v452_v25 }
  0xc2   : > { %v440_v8 = vadd.f32 %v436_v7, %v400_v4  ;;  %v468_v35 = vmul.f32 %v456_v30, %v456_v30 }
  0xc3   : > { %v458_v9 = vld [vmem:[#allocation3] sm:$0xff]  ;;  %v431_v10 = vpop.xlane.xlu1 %430  ;;  %v419_v12 = vpop.xlane.xlu0 %418 }
  0xc4   : > { %v462_v14 = vmul.f32 0.0078125, %v458_v9  ;;  %444 = vst.msk [vmem:[#allocation3 + $0x8] sm:$0xff] %vm340_vm1, %v440_v8  ;;  %v437_v15 = vadd.f32 %v431_v10, %v419_v12 }
  0xc6   : > { %v470_v17 = vsub.f32 %v462_v14, %v466_v13  ;;  %v441_v18 = vadd.f32 %v437_v15, %v401_v11 }
  0xc7   : > { %v434_v19 = vpop.xlane.xlu1 %433  ;;  %v422_v21 = vpop.xlane.xlu0 %421  ;;  %v453_v32 = vld [vmem:[#allocation2 + $0x18] sm:$0xff] }
  0xc8   : > { %v474_v23 = vmax.f32 %v470_v17, 0.0  ;;  %445 = vst.msk [vmem:[#allocation3 + $0x10] sm:$0xff] %vm340_vm1, %v441_v18  ;;  %v438_v24 = vadd.f32 %v434_v19, %v422_v21  ;;  %v457_v36 = vmul.f32 0.0078125, %v453_v32 }
  0xca   : > { %v478_v26 = vadd.f32 1e-05, %v474_v23  ;;  %v442_v27 = vadd.f32 %v438_v24, %v402_v20  ;;  %v469_v43 = vmul.f32 %v457_v36, %v457_v36 }
  0xcb   : > { %v459_v28 = vld [vmem:[#allocation3 + $0x8] sm:$0xff] }
  0xcc   : > { %706 = vrsqrt.f32 %v478_v26  ;;  %v463_v31 = vmul.f32 0.0078125, %v459_v28  ;;  %446 = vst.msk [vmem:[#allocation3 + $0x18] sm:$0xff] %vm340_vm1, %v442_v27 }
  0xce   : > { %v471_v33 = vsub.f32 %v463_v31, %v467_v29 }
  0xcf   : > { %v460_v34 = vld [vmem:[#allocation3 + $0x10] sm:$0xff] }
  0xd0   : > { %v475_v37 = vmax.f32 %v471_v33, 0.0  ;;  %v464_v38 = vmul.f32 0.0078125, %v460_v34 }
  0xd2   : > { %v479_v39 = vadd.f32 1e-05, %v475_v37  ;;  %v472_v40 = vsub.f32 %v464_v38, %v468_v35 }
  0xd3   : > { %v461_v41 = vld [vmem:[#allocation3 + $0x18] sm:$0xff] }
  0xd4   : > { %708 = vrsqrt.f32 %v479_v39  ;;  %v476_v44 = vmax.f32 %v472_v40, 0.0  ;;  %v465_v45 = vmul.f32 0.0078125, %v461_v41 }
  0xd6   : > { %v707_v46 = vpop.eup %706  ;;  %v480_v47 = vadd.f32 1e-05, %v476_v44  ;;  %v473_v48 = vsub.f32 %v465_v45, %v469_v43 }
  0xd7   : > { %v490_v49 = vmul.f32 %v707_v46, %v486_v42 }
  0xd8   : > { %710 = vrsqrt.f32 %v480_v47  ;;  %v477_v51 = vmax.f32 %v473_v48, 0.0 }
  0xd9   : > { %494 = vst.msk [vmem:[%s873_s22] sm:$0xff] %vm340_vm1, %v490_v49  ;;  %v502_v52 = vmul.f32 %v490_v49, %v454_v6  ;;  %v501_v6 = vld [vmem:[%s868_s15 + $0x18] sm:$0xff] }
  0xda   : > { %v481_v53 = vadd.f32 1e-05, %v477_v51 }
  0xdb   : > { %v506_v54 = vsub.f32 %v498_v50, %v502_v52 }
  0xdc   : > { %712 = vrsqrt.f32 %v481_v53 }
  0xdd   : > { %510 = vst.msk [vmem:[%s334_s26] sm:$0xff] %vm340_vm1, %v506_v54 }
  0xde   : > { %v709_v56 = vpop.eup %708 }
  0xdf   : > { %v491_v57 = vmul.f32 %v709_v56, %v487_v55 }
  0xe1   : > { %495 = vst.msk [vmem:[%s873_s22 + $0x8] sm:$0xff] %vm340_vm1, %v491_v57  ;;  %v503_v60 = vmul.f32 %v491_v57, %v455_v22 }
  0xe2   : > { %v711_v61 = vpop.eup %710 }
  0xe3   : > { %v507_v62 = vsub.f32 %v499_v58, %v503_v60  ;;  %v492_v63 = vmul.f32 %v711_v61, %v488_v59 }
  0xe5   : > { %511 = vst.msk [vmem:[%s334_s26 + $0x8] sm:$0xff] %vm340_vm1, %v507_v62  ;;  %496 = vst.msk [vmem:[%s873_s22 + $0x10] sm:$0xff] %vm340_vm1, %v492_v63  ;;  %v504_v2 = vmul.f32 %v492_v63, %v456_v30 }
  0xe6   : > { %v713_v3 = vpop.eup %712 }
  0xe7   : > { %v508_v4 = vsub.f32 %v500_v0, %v504_v2  ;;  %v493_v5 = vmul.f32 %v713_v3, %v489_v1 }
  0xe9   : > { %512 = vst.msk [vmem:[%s334_s26 + $0x10] sm:$0xff] %vm340_vm1, %v508_v4  ;;  %497 = vst.msk [vmem:[%s873_s22 + $0x18] sm:$0xff] %vm340_vm1, %v493_v5  ;;  %v505_v7 = vmul.f32 %v493_v5, %v457_v36 }
  0xeb   : > { %v509_v8 = vsub.f32 %v501_v6, %v505_v7 }
  0xed   : > { %513 = vst.msk [vmem:[%s334_s26 + $0x18] sm:$0xff] %vm340_vm1, %v509_v8 }
  0xee PF: > { %s15_s19 = sadd.s32 1, %s752_s19   ;;  %s917_s15 = smov %s740_s16 }
  0xef   : > { %p12_p10 = scmp.ge.s32.totalorder %s15_s19, 4   ;;  %s918_s16 = smov %s815_s23 }
  0xf0   : > { %s919_s17 = smov %s748_s18  ;;  %s920_s18 = smov %s922_s20 }
  0xf1   :  { %14 = sbr.rel (!%p12_p10) target bundleno = 3 (0x3), region = 131 }

</bundles_post_ra>
